<compile_context>
chip_gen: v7x
topology: tpu7x:2x2x1
jax: 0.10.0
libtpu: 0.0.40
codegen_flags: <defaults>
</compile_context>

<pallas_src>
import functools

import jax
import jax.numpy as jnp
from jax import lax
from jax.experimental import pallas as pl
from jax.experimental.pallas import tpu as pltpu

EPS = 1e-6  # norm_layer = partial(nn.LayerNorm, eps=1e-6) as used by MAE

# v7x has only 64 MiB of VMEM per TensorCore; keep the fused-blocks kernel well
# under that (also fine on v5e/v6e, which have 128 MiB and can raise this).
BLOCKS_VMEM_LIMIT = 50 * 1024 * 1024
LINEAR_VMEM_LIMIT = 32 * 1024 * 1024


# ---------------------------------------------------------------------------
# small helpers
# ---------------------------------------------------------------------------
def _layernorm(v, g, b):
    mu = jnp.mean(v, axis=-1, keepdims=True)
    var = jnp.mean((v - mu) ** 2, axis=-1, keepdims=True)
    return (v - mu) * jax.lax.rsqrt(var + EPS) * g + b


def _round_up(x, m):
    return ((x + m - 1) // m) * m


# ---------------------------------------------------------------------------
# decoder_embed: plain Linear, tiled over rows ("parallel" -> 2-TC sharding on v7x)
# ---------------------------------------------------------------------------
def _linear_kernel(x_ref, w_ref, b_ref, o_ref, *, compute_dtype):
    x = x_ref[...].astype(compute_dtype)
    o_ref[...] = (jnp.dot(x, w_ref[...], preferred_element_type=jnp.float32)
                  + b_ref[...]).astype(o_ref.dtype)


def linear_pallas(x2d, w, b2d, *, compute_dtype=jnp.bfloat16, tile_m=512):
    """x2d: (M, Din), w: (Din, Dout), b2d: (1, Dout) -> (M, Dout)."""
    M, Din = x2d.shape
    Dout = w.shape[1]
    w = w.astype(compute_dtype)
    tm = min(M, tile_m)
    Mp = _round_up(M, tm)
    if Mp != M:                       # rows are independent; keep edge tiles in-bounds
        x2d = jnp.pad(x2d, ((0, Mp - M), (0, 0)))
    out = pl.pallas_call(
        functools.partial(_linear_kernel, compute_dtype=compute_dtype),
        out_shape=jax.ShapeDtypeStruct((Mp, Dout), x2d.dtype),
        grid=(Mp // tm,),
        in_specs=[pl.BlockSpec((tm, Din), lambda i: (i, 0)),
                  pl.BlockSpec((Din, Dout), lambda i: (0, 0)),
                  pl.BlockSpec((1, Dout), lambda i: (0, 0))],
        out_specs=pl.BlockSpec((tm, Dout), lambda i: (i, 0)),
        compiler_params=pltpu.CompilerParams(
            dimension_semantics=("parallel",),
            vmem_limit_bytes=LINEAR_VMEM_LIMIT),
    )(x2d, w, b2d)
    return out[:M] if Mp != M else out


# ---------------------------------------------------------------------------
# decoder_norm + decoder_pred fused (LayerNorm -> Linear), lane-dense output
# ---------------------------------------------------------------------------
def _norm_linear_kernel(x_ref, g_ref, b_ref, w_ref, bias_ref, o_ref, *, compute_dtype):
    h = _layernorm(x_ref[...], g_ref[...], b_ref[...]).astype(compute_dtype)
    o_ref[...] = (jnp.dot(h, w_ref[...], preferred_element_type=jnp.float32)
                  + bias_ref[...]).astype(o_ref.dtype)


def norm_linear_pallas(x2d, g, b, w, bias, *, compute_dtype=jnp.bfloat16, tile_m=512):
    M, D = x2d.shape
    P = w.shape[1]
    P_pad = max(128, _round_up(P, 128))           # lane-dense stores (no vst.msk)
    if P_pad != P:
        w = jnp.pad(w, ((0, 0), (0, P_pad - P)))
        bias = jnp.pad(bias, ((0, 0), (0, P_pad - P)))
    w = w.astype(compute_dtype)
    tm = min(M, tile_m)
    Mp = _round_up(M, tm)
    if Mp != M:
        x2d = jnp.pad(x2d, ((0, Mp - M), (0, 0)))
    out = pl.pallas_call(
        functools.partial(_norm_linear_kernel, compute_dtype=compute_dtype),
        out_shape=jax.ShapeDtypeStruct((Mp, P_pad), x2d.dtype),
        grid=(Mp // tm,),
        in_specs=[pl.BlockSpec((tm, D), lambda i: (i, 0)),
                  pl.BlockSpec((1, D), lambda i: (0, 0)),
                  pl.BlockSpec((1, D), lambda i: (0, 0)),
                  pl.BlockSpec((D, P_pad), lambda i: (0, 0)),
                  pl.BlockSpec((1, P_pad), lambda i: (0, 0))],
        out_specs=pl.BlockSpec((tm, P_pad), lambda i: (i, 0)),
        compiler_params=pltpu.CompilerParams(
            dimension_semantics=("parallel",),
            vmem_limit_bytes=LINEAR_VMEM_LIMIT),
    )(x2d, g, b, w, bias)
    return out[:M, :P]


# ---------------------------------------------------------------------------
# all transformer blocks in one fused kernel: grid = (batch_tiles, depth)
# ---------------------------------------------------------------------------
def _decoder_blocks_kernel(x_ref, pos_ref,
                           ln1_g, ln1_b, qkv_w, qkv_b, proj_w, proj_b,
                           ln2_g, ln2_b, fc1_w, fc1_b, fc2_w, fc2_b,
                           o_ref, attn_acc,
                           *, num_heads, valid_len, compute_dtype):
    d_idx = pl.program_id(1)
    TB, Lp, D = o_ref.shape
    H = num_heads
    hd = D // H

    # Layer 0: initialize the VMEM-resident activation.  o_ref's block index is
    # constant over the depth axis, so it lives in VMEM across all layers and is
    # only written back to HBM when the batch tile changes / the grid ends.
    # pos_embed add is fused here (saves one HBM pass in the wrapper).
    @pl.when(d_idx == 0)
    def _():
        o_ref[...] = (x_ref[...] + pos_ref[...]).astype(o_ref.dtype)

    x = o_ref[...].astype(jnp.float32)                       # (TB, Lp, D)

    # padded key columns must not participate in the softmax
    if valid_len < Lp:
        key_mask = jax.lax.broadcasted_iota(jnp.int32, (1, 1, Lp), 2) < valid_len
    else:
        key_mask = None

    # ---------------- attention branch ----------------
    h = _layernorm(x, ln1_g[0], ln1_b[0])                    # f32
    hc = h.reshape(TB * Lp, D).astype(compute_dtype)
    qkv = (jnp.dot(hc, qkv_w[0], preferred_element_type=jnp.float32) + qkv_b[0])
    # one narrow (compute_dtype) copy is held across the head loop; the wide f32
    # intermediate is not kept live (1/sqrt(head_dim) already folded into qkv_w).
    qkv = qkv.reshape(TB, Lp, 3 * D).astype(compute_dtype)

    for hi in range(H):                                      # heads: batched over samples
        q = qkv[:, :, hi * hd:(hi + 1) * hd]
        k = qkv[:, :, D + hi * hd:D + (hi + 1) * hd]
        v = qkv[:, :, 2 * D + hi * hd:2 * D + (hi + 1) * hd]
        s = lax.dot_general(q, k, (((2,), (2,)), ((0,), (0,))),
                            preferred_element_type=jnp.float32)       # (TB, Lp, Lp)
        if key_mask is not None:
            s = jnp.where(key_mask, s, -1e30)
        s = s - jnp.max(s, axis=-1, keepdims=True)
        p = jnp.exp(s)
        p = p * pl.reciprocal(jnp.sum(p, axis=-1, keepdims=True), approx=True)
        o_h = lax.dot_general(p.astype(compute_dtype), v,
                              (((2,), (1,)), ((0,), (0,))),
                              preferred_element_type=jnp.float32)     # (TB, Lp, hd)
        # write head output straight into VMEM scratch (no big concat)
        attn_acc[:, :, hi * hd:(hi + 1) * hd] = o_h

    attn = attn_acc[...].reshape(TB * Lp, D).astype(compute_dtype)
    attn = jnp.dot(attn, proj_w[0], preferred_element_type=jnp.float32) + proj_b[0]
    x = x + attn.reshape(TB, Lp, D)
    o_ref[...] = x.astype(o_ref.dtype)

    # ---------------- MLP branch: chunked per sample to cap the f32 GELU temp ----------
    def mlp_body(bb, carry):
        xb = o_ref[bb].astype(jnp.float32)                   # (Lp, D)
        hb = _layernorm(xb, ln2_g[0], ln2_b[0]).astype(compute_dtype)
        hb = jnp.dot(hb, fc1_w[0], preferred_element_type=jnp.float32) + fc1_b[0]
        hb = jax.nn.gelu(hb, approximate=False)              # exact erf GELU (nn.GELU)
        hb = jnp.dot(hb.astype(compute_dtype), fc2_w[0],
                     preferred_element_type=jnp.float32) + fc2_b[0]
        o_ref[bb] = (xb + hb).astype(o_ref.dtype)
        return carry

    lax.fori_loop(0, TB, mlp_body, 0)
    # o_ref now holds the post-block activation; it stays VMEM-resident for the
    # next depth step and is DMA'd back to HBM only when this batch tile is done.


_BLOCK_WEIGHT_NAMES = ('ln1_g', 'ln1_b', 'qkv_w', 'qkv_b', 'proj_w', 'proj_b',
                       'ln2_g', 'ln2_b', 'fc1_w', 'fc1_b', 'fc2_w', 'fc2_b')
_MATMUL_WEIGHTS = {'qkv_w', 'proj_w', 'fc1_w', 'fc2_w'}


def decoder_blocks_pallas(x, pos, stacked, num_heads, *, valid_len,
                          compute_dtype=jnp.bfloat16, tile_b=8):
    """x: (B, Lp, D) f32, pos: (1, Lp, D) f32; Lp must be a multiple of 8."""
    B, Lp, D = x.shape
    assert D % num_heads == 0, "decoder_embed_dim must be divisible by num_heads"
    depth = stacked['qkv_w'].shape[0]

    # tile_b guidance: ~4 on v7x (64 MiB VMEM), 8 default, 16-32 on v5e/v6e with a
    # larger BLOCKS_VMEM_LIMIT (batch tiles re-stream the per-layer weights, so
    # bigger tiles mean proportionally less weight HBM traffic).
    # TODO(synk): for very large B a depth-outer nest with VMEM-resident weights
    # and streamed activations further cuts HBM traffic; not implemented here.
    tb = max(1, min(B, tile_b))
    Bp = _round_up(B, tb)
    if Bp != B:   # samples are independent; padded ones are sliced off below
        x = jnp.pad(x, ((0, Bp - B), (0, 0), (0, 0)))

    x_spec = pl.BlockSpec((tb, Lp, D), lambda b, d: (b, 0, 0))   # resident across depth
    pos_spec = pl.BlockSpec((1, Lp, D), lambda b, d: (0, 0, 0))

    weights, w_specs = [], []
    for name in _BLOCK_WEIGHT_NAMES:
        w = stacked[name]
        if name in _MATMUL_WEIGHTS:
            w = w.astype(compute_dtype)          # bf16 weights in HBM: half the DMA bytes
        weights.append(w)
        w_specs.append(pl.BlockSpec((1,) + w.shape[1:], lambda b, d: (d, 0, 0)))

    out = pl.pallas_call(
        functools.partial(_decoder_blocks_kernel, num_heads=num_heads,
                          valid_len=valid_len, compute_dtype=compute_dtype),
        out_shape=jax.ShapeDtypeStruct((Bp, Lp, D), x.dtype),
        grid=(Bp // tb, depth),                              # depth innermost
        in_specs=[x_spec, pos_spec] + w_specs,
        out_specs=x_spec,                                    # o_ref doubles as the resident x
        scratch_shapes=[pltpu.VMEM((tb, Lp, D), jnp.float32)],  # attention head staging
        compiler_params=pltpu.CompilerParams(
            dimension_semantics=("parallel", "arbitrary"),
            vmem_limit_bytes=BLOCKS_VMEM_LIMIT),
    )(x, pos, *weights)
    return out[:B] if Bp != B else out


# ---------------------------------------------------------------------------
# Parameters (deterministic, synthetic) and forward pass
# ---------------------------------------------------------------------------
def init_params(key, patch_size, in_chans, num_patches, embed_dim,
                dec_dim, num_heads, mlp_ratio, depth):
    assert dec_dim % num_heads == 0
    hd = dec_dim // num_heads
    scale = 1.0 / (hd ** 0.5)
    keys = jax.random.split(key, 4 + depth)

    def lin(k, din, dout):
        kw, kb = jax.random.split(k)
        return (jax.random.normal(kw, (din, dout), jnp.float32) * 0.02,
                jax.random.normal(kb, (1, dout), jnp.float32) * 0.02)

    p = {}
    p['embed_w'], p['embed_b'] = lin(keys[0], embed_dim, dec_dim)
    p['mask_token'] = jax.random.normal(keys[1], (1, 1, dec_dim), jnp.float32) * 0.02
    p['pos_embed'] = jax.random.normal(keys[2], (1, num_patches + 1, dec_dim),
                                       jnp.float32) * 0.02

    hidden = int(dec_dim * mlp_ratio)
    # fold 1/sqrt(head_dim) into the q columns of qkv (zero runtime cost)
    q_scale = jnp.concatenate([jnp.full((1, dec_dim), scale, jnp.float32),
                               jnp.ones((1, 2 * dec_dim), jnp.float32)], axis=1)

    per_layer = {n: [] for n in _BLOCK_WEIGHT_NAMES}
    for i in range(depth):
        bk = jax.random.split(keys[3 + i], 4)
        qkv_w, qkv_b = lin(bk[0], dec_dim, 3 * dec_dim)
        qkv_w = qkv_w * q_scale
        qkv_b = qkv_b * q_scale
        proj_w, proj_b = lin(bk[1], dec_dim, dec_dim)
        fc1_w, fc1_b = lin(bk[2], dec_dim, hidden)
        fc2_w, fc2_b = lin(bk[3], hidden, dec_dim)
        vals = dict(ln1_g=jnp.ones((1, dec_dim), jnp.float32),
                    ln1_b=jnp.zeros((1, dec_dim), jnp.float32),
                    qkv_w=qkv_w, qkv_b=qkv_b, proj_w=proj_w, proj_b=proj_b,
                    ln2_g=jnp.ones((1, dec_dim), jnp.float32),
                    ln2_b=jnp.zeros((1, dec_dim), jnp.float32),
                    fc1_w=fc1_w, fc1_b=fc1_b, fc2_w=fc2_w, fc2_b=fc2_b)
        for n, v in vals.items():
            per_layer[n].append(v)
    # stack all block weights along a leading depth axis (streamed over the depth grid axis)
    p['blocks'] = {n: jnp.stack(v, axis=0) for n, v in per_layer.items()}

    p['norm_g'] = jnp.ones((1, dec_dim), jnp.float32)
    p['norm_b'] = jnp.zeros((1, dec_dim), jnp.float32)
    p['pred_w'], p['pred_b'] = lin(keys[3 + depth], dec_dim, patch_size ** 2 * in_chans)
    return p


def decoder_forward(params, x, ids_restore, num_heads, *,
                    compute_dtype=jnp.bfloat16, tile_b=8):
    B, Lk, E = x.shape
    D = params['embed_w'].shape[1]

    # decoder_embed (tiled Pallas matmul)
    x = linear_pallas(x.reshape(B * Lk, E), params['embed_w'], params['embed_b'],
                      compute_dtype=compute_dtype).reshape(B, Lk, D)

    # TODO(synk): the mask-token insertion + gather could be fused into the first
    # block via PrefetchScalarGridSpec + pl.Element row-gather; kept as plain JAX
    # index plumbing here (matches torch.gather semantics exactly).
    N = ids_restore.shape[1]
    L = N + 1
    Lp = _round_up(L, 8)  # token axis padded so in-kernel reshapes are tile aligned
    mask_tokens = jnp.broadcast_to(params['mask_token'], (B, N + 1 - Lk, D))
    x_ = jnp.concatenate([x[:, 1:, :], mask_tokens], axis=1)
    idx = jnp.broadcast_to(ids_restore[:, :, None].astype(jnp.int32), (B, N, D))
    x_ = jnp.take_along_axis(x_, idx, axis=1)
    parts = [x[:, :1, :], x_]
    if Lp != L:
        parts.append(jnp.zeros((B, Lp - L, D), x.dtype))     # pad fused into the concat
    x = jnp.concatenate(parts, axis=1)                       # (B, Lp, D)

    pos = params['pos_embed']                                # (1, L, D); add fused in-kernel
    if Lp != L:
        pos = jnp.pad(pos, ((0, 0), (0, Lp - L), (0, 0)))

    # all transformer blocks fused into one pallas_call, activations VMEM-resident
    x = decoder_blocks_pallas(x, pos, params['blocks'], num_heads, valid_len=L,
                              compute_dtype=compute_dtype, tile_b=tile_b)
    x = x[:, :L, :]

    # decoder_norm + decoder_pred (fused, lane-dense padded output)
    out = norm_linear_pallas(x.reshape(B * L, D), params['norm_g'], params['norm_b'],
                             params['pred_w'], params['pred_b'],
                             compute_dtype=compute_dtype)
    P = params['pred_w'].shape[1]
    out = out.reshape(B, L, P)

    # drop cls token
    return out[:, 1:, :]


# ---------------------------------------------------------------------------
if __name__ == "__main__":
    # small, self-consistent MAE-decoder config
    patch_size, in_chans = 2, 3
    num_patches = 16                     # 4x4 grid of 2x2 patches
    embed_dim = 32
    decoder_embed_dim = 32
    decoder_num_heads = 4
    mlp_ratio = 4.0
    decoder_depth = 2
    B, len_keep = 2, 8                   # encoder kept 8 patches (+ cls token)

    key = jax.random.PRNGKey(0)
    kp, kx, kperm = jax.random.split(key, 3)

    params = init_params(kp, patch_size, in_chans, num_patches, embed_dim,
                         decoder_embed_dim, decoder_num_heads, mlp_ratio,
                         decoder_depth)

    x = jax.random.normal(kx, (B, 1 + len_keep, embed_dim), jnp.float32)
    ids_restore = jnp.stack(
        [jax.random.permutation(k, num_patches)
         for k in jax.random.split(kperm, B)]).astype(jnp.int32)

    # default path: bf16 matmul operands (MXU-native on v5e/v6e/v7x), f32 accumulation
    out = decoder_forward(params, x, ids_restore, decoder_num_heads)
    out = jax.block_until_ready(out)
    assert out.shape == (B, num_patches, patch_size ** 2 * in_chans), out.shape
    assert bool(jnp.all(jnp.isfinite(out)))

    # full-f32 path through the same kernels (closest to torch reference numerics)
    out_f32 = decoder_forward(params, x, ids_restore, decoder_num_heads,
                              compute_dtype=jnp.float32)
    out_f32 = jax.block_until_ready(out_f32)
    assert out_f32.shape == out.shape
    assert bool(jnp.all(jnp.isfinite(out_f32)))
    # loose bf16-vs-f32 sanity check (not a bit-exact parity claim)
    assert float(jnp.max(jnp.abs(out.astype(jnp.float32) - out_f32))) < 0.5

    print("KERNEL_OK")
</pallas_src>

<mosaic_0001>
module attributes {stable_mosaic.version = 11 : i64} {
  func.func @_linear_kernel(%arg0: i32, %arg1: memref<18x32xf32, #tpu.memory_space<vmem>>, %arg2: memref<32x32xbf16, #tpu.memory_space<vmem>>, %arg3: memref<1x32xf32, #tpu.memory_space<vmem>>, %arg4: memref<18x32xf32, #tpu.memory_space<vmem>>) attributes {dimension_semantics = [#tpu.dimension_semantics<parallel>], iteration_bounds = array<i64: 1>, scalar_prefetch = 0 : i64, scratch_operands = 0 : i64, tpu.core_type = #tpu.core_type<tc>, window_params = [{transform_indices = @transform_0, window_bounds = array<i64: 18, 32>}, {pipeline_mode = #tpu.pipeline_mode<synchronous>, transform_indices = @transform_1, window_bounds = array<i64: 32, 32>}, {pipeline_mode = #tpu.pipeline_mode<synchronous>, transform_indices = @transform_2, window_bounds = array<i64: 1, 32>}, {transform_indices = @transform_3, window_bounds = array<i64: 18, 32>}]} {
    %c0 = arith.constant 0 : index
    %c0_0 = arith.constant 0 : index
    %0 = vector.load %arg1[%c0, %c0_0] : memref<18x32xf32, #tpu.memory_space<vmem>>, vector<18x32xf32>
    %1 = arith.truncf %0 : vector<18x32xf32> to vector<18x32xbf16>
    %c0_1 = arith.constant 0 : index
    %c0_2 = arith.constant 0 : index
    %2 = vector.load %arg2[%c0_1, %c0_2] : memref<32x32xbf16, #tpu.memory_space<vmem>>, vector<32x32xbf16>
    %cst = arith.constant dense<0.000000e+00> : vector<18x32xf32>
    %3 = tpu.matmul %1, %2, %cst {dimension_numbers = #tpu.dot_dimension_numbers<[1], [0], [0], [1], [0, 0, 1, 1], [], []>} : vector<18x32xbf16>, vector<32x32xbf16>, vector<18x32xf32> -> vector<18x32xf32>
    %c0_3 = arith.constant 0 : index
    %c0_4 = arith.constant 0 : index
    %4 = vector.load %arg3[%c0_3, %c0_4] : memref<1x32xf32, #tpu.memory_space<vmem>>, vector<1x32xf32>
    %5 = vector.broadcast %4 : vector<1x32xf32> to vector<18x32xf32>
    %6 = arith.addf %3, %5 : vector<18x32xf32>
    %c0_5 = arith.constant 0 : index
    %c0_6 = arith.constant 0 : index
    %7 = vector.load %arg4[%c0_5, %c0_6] : memref<18x32xf32, #tpu.memory_space<vmem>>, vector<18x32xf32>
    tpu.vector_store %arg4[%c0_5, %c0_6], %6 {strides = array<i32>} : memref<18x32xf32, #tpu.memory_space<vmem>>, vector<18x32xf32>,
    return
  }
  func.func @transform_0(%arg0: i32) -> (i32, i32) {
    %c0_i32 = arith.constant 0 : i32
    %c0_i32_0 = arith.constant 0 : i32
    return %arg0, %c0_i32 : i32, i32
  }
  func.func @transform_1(%arg0: i32) -> (i32, i32) {
    %c0_i32 = arith.constant 0 : i32
    %c0_i32_0 = arith.constant 0 : i32
    %c0_i32_1 = arith.constant 0 : i32
    return %c0_i32, %c0_i32_0 : i32, i32
  }
  func.func @transform_2(%arg0: i32) -> (i32, i32) {
    %c0_i32 = arith.constant 0 : i32
    %c0_i32_0 = arith.constant 0 : i32
    %c0_i32_1 = arith.constant 0 : i32
    return %c0_i32, %c0_i32_0 : i32, i32
  }
  func.func @transform_3(%arg0: i32) -> (i32, i32) {
    %c0_i32 = arith.constant 0 : i32
    %c0_i32_0 = arith.constant 0 : i32
    return %arg0, %c0_i32 : i32, i32
  }
}

</mosaic_0001>

<bundles_post_ra>
// kernel: tpu_custom_call.1
= control target key start
LH: loop header
LB: loop body
LE: loop exit
PB: predicated region body
PF: predicated region fallthrough
CT: control target
= control target key end

     0   :  { %8 = vsyncpa [#allocation3], 0  ;;  %s323_s0 = inlined_call_operand.hbm [shape: f32[18,32], index: 0, kind: input, shape index: {}]   ;;  %s324_s1 = inlined_call_operand.hbm [shape: bf16[32,32], index: 1, kind: input, shape index: {}]   ;;  %s325_s2 = inlined_call_operand.vmem [shape: f32[1,32], index: 2, kind: input, shape index: {}]   ;;  %s326_s3 = inlined_call_operand.hbm [shape: f32[18,32], index: 3, kind: output, shape index: {}]  }
   0x1   :  { %9 = vsyncpa [#allocation6], 0 }
   0x2   :  { %10 = vsyncpa [#allocation4], 0  ;;  %s247_s12 = smov [#allocation2]   ;;  %s175_s16 = scalar_lea.hbm %s323_s0, 384 }
   0x3   :  { %s16_s13 = sshll.u32 %s247_s12, 4  ;;  %p176_p0 = scmp.ne.s32.totalorder %s323_s0, %s175_s16  ;;  %s17_s13 = int_to_ptr.vmem [resolvable:$true] %s16_s13 }
   0x4   :  { %p179_p1 = scmp.lt.u32.totalorder %s175_s16, %s323_s0 }
   0x6   :  { %p181_p2 = pnand %p179_p1, %p176_p0 }
   0x8   :  { %184 = shalt.err (!%p181_p2)
}
   0x9   :  { %s185_s21 = scalar_lea.vmem %s17_s13, 384  ;;  %p190_p4 = scmp.lt.s32.totalorder %s17_s13, %s17_s13 }
   0xa   :  { %p186_p3 = scmp.ne.s32.totalorder %s17_s13, %s185_s21  ;;  %p191_p5 = scmp.lt.s32.totalorder %s185_s21, %s185_s21 }
   0xc   :  { %p192_p6 = por %p191_p5, %p190_p4 }
   0xe   :  { %p193_p7 = pnand %p192_p6, %p186_p3 }
  0x10   :  { %196 = shalt.err (!%p193_p7)
}
  0x11   :  { %s248_s22 = smov 128   ;;  %s249_s23 = smov 8  }
  0x12   :  { %22 = dma.hbm_to_vmem [thread:$0]  %s323_s0, 384, %s17_s13, [#allocation3], %s248_s22, %s248_s22, %s249_s23  }
  0x13   :  { %s250_s26 = smov [#allocation5]   ;;  %s197_s30 = scalar_lea.hbm %s324_s1, 256 }
  0x14   :  { %s28_s27 = sshll.u32 %s250_s26, 4  ;;  %p198_p8 = scmp.ne.s32.totalorder %s324_s1, %s197_s30  ;;  %s29_s27 = int_to_ptr.vmem [resolvable:$true] %s28_s27 }
  0x15   :  { %p201_p9 = scmp.lt.u32.totalorder %s197_s30, %s324_s1 }
  0x17   :  { %p203_p10 = pnand %p201_p9, %p198_p8 }
  0x19   :  { %206 = shalt.err (!%p203_p10)
}
  0x1a   :  { %s207_s8 = scalar_lea.vmem %s29_s27, 256  ;;  %p212_p12 = scmp.lt.s32.totalorder %s29_s27, %s29_s27 }
  0x1b   :  { %p208_p11 = scmp.ne.s32.totalorder %s29_s27, %s207_s8  ;;  %p213_p13 = scmp.lt.s32.totalorder %s207_s8, %s207_s8 }
  0x1d   :  { %p214_p0 = por %p213_p13, %p212_p12 }
  0x1f   :  { %p215_p1 = pnand %p214_p0, %p208_p11 }
  0x21   :  { %218 = shalt.err (!%p215_p1)
}
  0x22   :  { %s251_s0 = smov 64   ;;  %s252_s9 = smov 4  }
  0x23   :  { %34 = dma.hbm_to_vmem [thread:$0]  %s324_s1, 256, %s29_s27, [#allocation6], %s251_s0, %s251_s0, %s252_s9  }
  0x24   :  { %241 = dma.done.wait [#allocation3], 384  }
  0x25   :  { %242 = vsyncadd [#allocation3], 4294966912 }
  0x26   :  { %243 = dma.done.wait [#allocation6], 256  }
  0x27   :  { %244 = vsyncadd [#allocation6], 4294967040  ;;  %v173_v0 = vld [vmem:[#allocation5] sm:$0xff]   ;;  %v174_v1 = vld [vmem:[#allocation5 + $0x8] sm:$0xff]   ;;  %vm72_vm0 = vcmask 261120   ;;  %vm129_vm1 = vcmask 254976  }
  0x28   :  { %158 = vmatprep.subr.bf16.mxu0 %v173_v0  ;;  %v44_v2 = vld [vmem:[#allocation2] sm:$0xff]  ;;  %v45_v3 = vld [vmem:[#allocation2 + $0x8] sm:$0xff]  ;;  %v46_v5 = vld [vmem:[#allocation2 + $0x10] sm:$0x3]  ;;  %s253_s13 = smov [#allocation7]  }
  0x29   :  { %159 = vmatpush3.bf16.msra.mxu0 %v173_v0  ;;  %v47_v4 = vpack.c.bf16 %v45_v3, %v44_v2  ;;  %v48_v6 = vpack.c.bf16 %v46_v5, %v46_v5  ;;  %v149_v7 = vld [vmem:[%s325_s2] ss:$0 sm:$0xff]  ;;  %s136_s14 = sshll.u32 %s253_s13, 4  ;;  %s137_s14 = int_to_ptr.vmem [resolvable:$true] %s136_s14 }
  0x2a   :  { %160 = vmatprep.subr.bf16.mxu0 %v174_v1  ;;  %s219_s15 = scalar_lea.vmem %s137_s14, 384  ;;  %p224_p3 = scmp.lt.s32.totalorder %s137_s14, %s137_s14 }
  0x2b   :  { %162 = vmatprep.mubr.msk.bf16.mxu0 %vm72_vm0, %v47_v4  ;;  %p220_p2 = scmp.ne.s32.totalorder %s137_s14, %s219_s15  ;;  %p225_p4 = scmp.lt.s32.totalorder %s219_s15, %s219_s15 }
  0x2d   :  { %161 = vmatpush3.bf16.msra.mxu0 %v174_v1  ;;  %p226_p5 = por %p225_p4, %p224_p3 }
  0x2f   :  { %p227_p6 = pnand %p226_p5, %p220_p2 }
  0x30   :  { %163 = vmatmul.mubr.msk.bf16.vlgmr.msra.gmra.mrb[0].mxu0 %vm72_vm0, %v48_v6 }
 0x103   :  { %v164_v8 = vpop.f32.mrb[0].mxu0 }
 0x104   :  { %v122_v9 = vadd.f32 %v164_v8, %v149_v7  ;;  %v113_v10 = vpop.f32.mrb[1].mxu0 }
 0x105   :  { %v114_v11 = vadd.f32 %v149_v7, %v113_v10  ;;  %v165_v12 = vpop.f32.mrb[2].mxu0 }
 0x106   :  { %130 = vst.msk [vmem:[#allocation7 + $0x10] sm:$0x3] %vm129_vm1, %v122_v9  ;;  %v116_v13 = vpop.f32.mrb[3].mxu0 }
 0x107   :  { %127 = vst.msk [vmem:[#allocation7] sm:$0xff] %vm72_vm0, %v114_v11  ;;  %v117_v14 = vadd.f32 %v149_v7, %v116_v13 }
 0x109   :  { %128 = vst.msk [vmem:[#allocation7 + $0x8] sm:$0xff] %vm72_vm0, %v117_v14 }
 0x10a   :  { %230 = shalt.err (!%p227_p6)
}
 0x10b   :  { %s231_s17 = scalar_lea.hbm %s326_s3, 384 }
 0x10c   :  { %p232_p7 = scmp.ne.s32.totalorder %s326_s3, %s231_s17  ;;  %p235_p8 = scmp.lt.u32.totalorder %s231_s17, %s326_s3 }
 0x10e   :  { %p237_p9 = pnand %p235_p8, %p232_p7 }
 0x110   :  { %240 = shalt.err (!%p237_p9)
}
 0x111   :  { %142 = dma.vmem_to_hbm [thread:$0]  %s137_s14, 384, %s326_s3, [#allocation4], %s248_s22, %s248_s22, %s249_s23  }
 0x112   :  { %245 = dma.done.wait [#allocation4], 384  }
 0x113   :  { %246 = vsyncadd [#allocation4], 4294966912 }
 0x114   :  { %146 = vsyncpa [#allocation3], 1 }
 0x115   :  { %147 = vsyncpa [#allocation6], 1 }
 0x116   :  { %148 = vsyncpa [#allocation4], 1 }

</bundles_post_ra>
